<compile_context>
chip_gen: v7x
topology: tpu7x:2x2x1
jax: 0.10.0
libtpu: 0.0.40
codegen_flags: <defaults>
</compile_context>

<pallas_src>
import jax
import jax.numpy as jnp
from jax.experimental import pallas as pl
from jax.experimental.pallas import tpu as pltpu

_MIB = 1 << 20
_LANE_CHOICES = (512, 256, 128)  # lane-dense last-dim candidates (x128 each)


def _h_sigmoid_kernel(x_ref, o_ref):
    x = x_ref[...]
    # ReLU6(x + 3) / 6 == clamp(x + 3, 0, 6) / 6  (exact torch semantics)
    y = jnp.clip(x + 3.0, 0.0, 6.0) / 6.0
    o_ref[...] = y.astype(o_ref.dtype)


def _round_up(n: int, m: int) -> int:
    return ((n + m - 1) // m) * m


def _sublane_multiple(dtype) -> int:
    # Sub-32-bit dtypes pack along sublanes: 8 for f32, 16 for bf16, 32 for i8.
    itemsize = jnp.dtype(dtype).itemsize
    return max(8, 32 // itemsize)


def _pick_lanes(total: int):
    """Pick a lane width (multiple of 128) that divides `total` if possible."""
    for lanes in _LANE_CHOICES:
        if total % lanes == 0:
            return lanes, 0
    # Ragged total: pad by <128 elements (one jnp.pad copy, rare for CNN acts).
    # TODO(synk): handle this tail in-kernel with a masked store instead.
    lanes = 128
    return lanes, _round_up(total, lanes) - total


def _tile_budget():
    """(tile_bytes, vmem_limit_bytes), generation-aware when queryable."""
    tile_bytes = 4 * _MIB      # v5e/v6e sweet spot (~85% of HBM roofline)
    vmem_limit = 48 * _MIB     # >= 4 x tile (in+out, double-buffered)
    try:
        info = pltpu.get_tpu_info()
        vmem_cap = getattr(info, "vmem_capacity_bytes", None)
        if vmem_cap is not None and vmem_cap <= 96 * _MIB:
            # v7x-class chip: 64 MiB VMEM but ~3.2 TB/s HBM, so use bigger
            # tiles to amortize the ~0.35 us per-grid-step overhead.
            tile_bytes = 8 * _MIB
            vmem_limit = 48 * _MIB  # 4 x 8 MiB = 32 MiB, under 64 MiB physical
    except Exception:
        pass
    return tile_bytes, vmem_limit


def h_sigmoid(x: jax.Array) -> jax.Array:
    """Elementwise hard-sigmoid, exact match of torch ReLU6(x+3)/6.

    Works for any shape; internally flattens to a lane-dense (rows, L) slab,
    tiles it over a 1-D grid with byte-budgeted blocks, and lets Pallas mask
    the partial boundary block (no full-tensor pad/slice copies when the
    element count is a multiple of 128).
    """
    orig_shape = x.shape
    dtype = x.dtype
    total = int(x.size)
    if total == 0:
        return x

    itemsize = jnp.dtype(dtype).itemsize
    sub = _sublane_multiple(dtype)

    lanes, pad = _pick_lanes(total)
    flat = x.reshape(-1)
    if pad:
        flat = jnp.pad(flat, (0, pad))
    rows = (total + pad) // lanes
    x2 = flat.reshape(rows, lanes)

    tile_bytes, vmem_limit = _tile_budget()
    budget_rows = max(sub, (tile_bytes // (lanes * itemsize)) // sub * sub)

    if rows <= sub:
        # Single tiny block; block_shape == full array dims is always legal.
        tile_rows = rows
    else:
        # Cap the tile so the grid has >= 2 steps whenever possible, letting
        # the "parallel" axis feed both v7x TensorCores.
        tile_rows = min(budget_rows, _round_up(pl.cdiv(rows, 2), sub))
    grid = (pl.cdiv(rows, tile_rows),)

    out2 = pl.pallas_call(
        _h_sigmoid_kernel,
        out_shape=jax.ShapeDtypeStruct((rows, lanes), dtype),
        grid_spec=pl.GridSpec(
            grid=grid,
            in_specs=[pl.BlockSpec((tile_rows, lanes), lambda i: (i, 0))],
            out_specs=pl.BlockSpec((tile_rows, lanes), lambda i: (i, 0)),
        ),
        compiler_params=pltpu.CompilerParams(
            dimension_semantics=("parallel",),
            vmem_limit_bytes=int(vmem_limit),
        ),
    )(x2)

    if pad:
        return out2.reshape(-1)[:total].reshape(orig_shape)
    return out2.reshape(orig_shape)


if __name__ == "__main__":
    key = jax.random.PRNGKey(0)
    # NCHW input consistent with the ResNet-CA usage of h_sigmoid.
    x = jax.random.normal(key, (2, 4, 16, 16), dtype=jnp.float32) * 4.0

    y = h_sigmoid(x)
    y = jax.block_until_ready(y)

    # Reference check in plain JAX.
    y_ref = jnp.clip(x + 3.0, 0.0, 6.0) / 6.0
    assert y.shape == x.shape
    assert y.dtype == x.dtype
    assert jnp.allclose(y, y_ref, atol=1e-6), "mismatch vs reference"

    # Also exercise a ragged size (not a multiple of 128) and bf16 packing.
    x2 = jax.random.normal(jax.random.PRNGKey(1), (3, 5, 7, 11), jnp.float32)
    assert jnp.allclose(h_sigmoid(x2), jnp.clip(x2 + 3.0, 0.0, 6.0) / 6.0,
                        atol=1e-6)
    x3 = jax.random.normal(jax.random.PRNGKey(2), (2, 8, 16, 16), jnp.bfloat16)
    y3 = jax.block_until_ready(h_sigmoid(x3))
    y3_ref = jnp.clip(x3 + 3.0, 0.0, 6.0) / 6.0
    assert y3.dtype == x3.dtype
    assert jnp.allclose(y3.astype(jnp.float32), y3_ref.astype(jnp.float32),
                        atol=1e-2)

    print("KERNEL_OK")
</pallas_src>

<mosaic_0001>
module attributes {stable_mosaic.version = 11 : i64} {
  func.func @_h_sigmoid_kernel(%arg0: i32, %arg1: memref<4x512xf32, #tpu.memory_space<vmem>>, %arg2: memref<4x512xf32, #tpu.memory_space<vmem>>) attributes {dimension_semantics = [#tpu.dimension_semantics<parallel>], iteration_bounds = array<i64: 1>, scalar_prefetch = 0 : i64, scratch_operands = 0 : i64, tpu.core_type = #tpu.core_type<tc>, window_params = [{transform_indices = @transform_0, window_bounds = array<i64: 4, 512>}, {transform_indices = @transform_1, window_bounds = array<i64: 4, 512>}]} {
    %c0 = arith.constant 0 : index
    %c0_0 = arith.constant 0 : index
    %0 = vector.load %arg1[%c0, %c0_0] : memref<4x512xf32, #tpu.memory_space<vmem>>, vector<4x512xf32>
    %cst = arith.constant 3.000000e+00 : f32
    %1 = vector.broadcast %cst : f32 to vector<4x512xf32>
    %2 = arith.addf %0, %1 : vector<4x512xf32>
    %cst_1 = arith.constant 0.000000e+00 : f32
    %cst_2 = arith.constant 6.000000e+00 : f32
    %3 = vector.broadcast %cst_1 : f32 to vector<4x512xf32>
    %4 = arith.maximumf %3, %2 : vector<4x512xf32>
    %5 = vector.broadcast %cst_2 : f32 to vector<4x512xf32>
    %6 = arith.minimumf %5, %4 : vector<4x512xf32>
    %cst_3 = arith.constant 6.000000e+00 : f32
    %7 = vector.broadcast %cst_3 : f32 to vector<4x512xf32>
    %8 = arith.divf %6, %7 : vector<4x512xf32>
    %c0_4 = arith.constant 0 : index
    %c0_5 = arith.constant 0 : index
    %9 = vector.load %arg2[%c0_4, %c0_5] : memref<4x512xf32, #tpu.memory_space<vmem>>, vector<4x512xf32>
    tpu.vector_store %arg2[%c0_4, %c0_5], %8 {strides = array<i32>} : memref<4x512xf32, #tpu.memory_space<vmem>>, vector<4x512xf32>,
    return
  }
  func.func @transform_0(%arg0: i32) -> (i32, i32) {
    %c0_i32 = arith.constant 0 : i32
    %c0_i32_0 = arith.constant 0 : i32
    return %arg0, %c0_i32 : i32, i32
  }
  func.func @transform_1(%arg0: i32) -> (i32, i32) {
    %c0_i32 = arith.constant 0 : i32
    %c0_i32_0 = arith.constant 0 : i32
    return %arg0, %c0_i32 : i32, i32
  }
}

</mosaic_0001>

<bundles_post_ra>
// kernel: tpu_custom_call.1
= control target key start
LH: loop header
LB: loop body
LE: loop exit
PB: predicated region body
PF: predicated region fallthrough
CT: control target
= control target key end

     0   :  { %6 = vsyncpa [#allocation3], 0  ;;  %s135_s0 = inlined_call_operand.hbm [shape: f32[4,512], index: 0, kind: input, shape index: {}]   ;;  %s136_s1 = inlined_call_operand.hbm [shape: f32[4,512], index: 1, kind: output, shape index: {}]  }
   0x1   :  { %7 = vsyncpa [#allocation4], 0  ;;  %s99_s6 = smov [#allocation2]   ;;  %s51_s10 = scalar_lea.hbm %s135_s0, 256 }
   0x2   :  { %s14_s7 = sshll.u32 %s99_s6, 4  ;;  %p52_p0 = scmp.ne.s32.totalorder %s135_s0, %s51_s10  ;;  %s15_s7 = int_to_ptr.vmem [resolvable:$true] %s14_s7 }
   0x3   :  { %p55_p1 = scmp.lt.u32.totalorder %s51_s10, %s135_s0 }
   0x5   :  { %p57_p2 = pnand %p55_p1, %p52_p0 }
   0x7   :  { %60 = shalt.err (!%p57_p2)
}
   0x8   :  { %s61_s15 = scalar_lea.vmem %s15_s7, 256  ;;  %p66_p4 = scmp.lt.s32.totalorder %s15_s7, %s15_s7 }
   0x9   :  { %p62_p3 = scmp.ne.s32.totalorder %s15_s7, %s61_s15  ;;  %p67_p5 = scmp.lt.s32.totalorder %s61_s15, %s61_s15 }
   0xb   :  { %p68_p6 = por %p67_p5, %p66_p4 }
   0xd   :  { %p69_p7 = pnand %p68_p6, %p62_p3 }
   0xf   :  { %72 = shalt.err (!%p69_p7)
}
  0x10   :  { %17 = dma.hbm_to_vmem [thread:$0]  %s135_s0, 256, %s15_s7, [#allocation3]  }
  0x11   :  { %95 = dma.done.wait [#allocation3], 256  }
  0x12   :  { %96 = vsyncadd [#allocation3], 4294967040  ;;  %v21_v0 = vld [vmem:[#allocation2] sm:$0xff]  ;;  %v22_v1 = vld [vmem:[#allocation2 + $0x8] sm:$0xff]  ;;  %s100_s18 = smov [#allocation5]  }
  0x13   :  { %v23_v2 = vadd.f32 3.0, %v21_v0  ;;  %v24_v3 = vadd.f32 3.0, %v22_v1  ;;  %s40_s19 = sshll.u32 %s100_s18, 4  ;;  %s41_s19 = int_to_ptr.vmem [resolvable:$true] %s40_s19 }
  0x14   :  { %s73_s20 = scalar_lea.vmem %s41_s19, 256  ;;  %p78_p9 = scmp.lt.s32.totalorder %s41_s19, %s41_s19 }
  0x15   :  { %v25_v4 = vmax.f32 %v23_v2, 0.0  ;;  %v26_v5 = vmax.f32 %v24_v3, 0.0  ;;  %p74_p8 = scmp.ne.s32.totalorder %s41_s19, %s73_s20  ;;  %p79_p10 = scmp.lt.s32.totalorder %s73_s20, %s73_s20 }
  0x17   :  { %v27_v6 = vmin.f32 %v25_v4, 6.0  ;;  %v28_v7 = vmin.f32 %v26_v5, 6.0  ;;  %p80_p11 = por %p79_p10, %p78_p9 }
  0x19   :  { %v30_v8 = vmul.f32 0.16666667, %v27_v6  ;;  %v31_v9 = vmul.f32 0.16666667, %v28_v7  ;;  %p81_p12 = pnand %p80_p11, %p74_p8 }
  0x1b   :  { %32 = vst [vmem:[#allocation5] sm:$0xff] %v30_v8  ;;  %33 = vst [vmem:[#allocation5 + $0x8] sm:$0xff] %v31_v9 }
  0x1c   :  { %84 = shalt.err (!%p81_p12)
}
  0x1d   :  { %s85_s22 = scalar_lea.hbm %s136_s1, 256 }
  0x1e   :  { %p86_p13 = scmp.ne.s32.totalorder %s136_s1, %s85_s22  ;;  %p89_p0 = scmp.lt.u32.totalorder %s85_s22, %s136_s1 }
  0x20   :  { %p91_p1 = pnand %p89_p0, %p86_p13 }
  0x22   :  { %94 = shalt.err (!%p91_p1)
}
  0x23   :  { %43 = dma.vmem_to_hbm [thread:$0]  %s41_s19, 256, %s136_s1, [#allocation4]  }
  0x24   :  { %97 = dma.done.wait [#allocation4], 256  }
  0x25   :  { %98 = vsyncadd [#allocation4], 4294967040 }
  0x26   :  { %47 = vsyncpa [#allocation3], 1 }
  0x27   :  { %48 = vsyncpa [#allocation4], 1 }

</bundles_post_ra>
